<compile_context>
chip_gen: v7x
topology: tpu7x:2x2x1
jax: 0.10.0
libtpu: 0.0.40
codegen_flags: <defaults>
</compile_context>

<pallas_src>
import jax
import jax.numpy as jnp
import numpy as np
from jax.experimental import pallas as pl
from jax.experimental.pallas import tpu as pltpu


def _trl_kernel(x_ref, f1_ref, q_ref, wt_ref, y_ref):
    # x_ref : (B, tile_i, d23)      input tile
    # f1_ref: (tile_i, r1)          factor-1 rows for this tile
    # q_ref : (n_out, r1, d23)      resident factor-combined core (tiny)
    # wt_ref: (n_out, tile_i, d23)  W^T tile, lane-dense along d23
    # y_ref : (B, n_out)            partial y for this i-tile (leading grid dim squeezed)
    x3 = x_ref[...]
    f1t = f1_ref[...]
    q3 = q_ref[...]
    b, tile_i, d23 = x3.shape
    n_out, r1, _ = q3.shape

    wt = jnp.zeros((n_out, tile_i, d23), jnp.float32)
    y = jnp.zeros((b, n_out), jnp.float32)
    for a in range(r1):  # static unroll; r1 is the (small) Tucker rank
        f1a = f1t[:, a:a + 1]                                  # (tile_i, 1)
        qa = q3[:, a, :]                                       # (n_out, d23)
        # W^T contribution: outer product along (i) x (jk) -- pure VPU broadcast-FMA.
        wt = wt + f1a[None, :, :] * qa[:, None, :]             # (n_out, tile_i, d23)
        # y contribution: v[b, jk] = sum_i x[b,i,jk] * f1[i,a]; then contract d23 on MXU.
        v = jnp.sum(x3 * f1a[None, :, :], axis=1)              # (B, d23)
        y = y + jax.lax.dot_general(
            v, qa, (((1,), (1,)), ((), ())),
            preferred_element_type=jnp.float32)                # (B, n_out)

    wt_ref[...] = wt
    y_ref[...] = y


def _pick_tile_i(d1, d23, B, n_out, vmem_budget_bytes=8 * 1024 * 1024):
    """Rows of d1 processed per grid step.

    Streamed blocks are (B, tile_i, d23) in + (n_out, tile_i, d23) out, double
    buffered -> footprint ~= 2 * (B + n_out) * tile_i * d23 * 4 bytes.  Pick the
    largest legal tile (multiple of 8 dividing d1, or full d1) under the budget
    so per-step overhead (~0.35us) is amortized and DMAs are large, while
    staying below the smallest default scoped-VMEM limit (16 MiB on v5e).
    """
    def footprint(ti):
        return 2 * (B + n_out) * ti * d23 * 4

    if d1 <= 8 or d1 % 8 != 0:
        return d1  # full-dim block is always a legal block shape
    best = 8
    t = 8
    while t <= d1:
        if d1 % t == 0 and footprint(t) <= vmem_budget_bytes:
            best = t
        t += 8
    return best


def trl_forward(x, core, factors, bias, *, weight_layout="torch"):
    """x: (B, d1, d2, d3) f32. Returns (W, y) matching the PyTorch TRL.forward."""
    B, d1, d2, d3 = x.shape
    r1, r2, r3, r4 = core.shape
    f1, f2, f3, f4 = factors
    n_out = f4.shape[0]
    d23 = d2 * d3

    # Parameter-only glue (tiny: O(n_out * r1 * r2 * r3 * d23) MACs).
    q = jnp.einsum("abcd,od,jb,kc->oajk", core, f4, f2, f3).reshape(n_out, r1, d23)
    x3 = x.reshape(B, d1, d23)

    tile_i = _pick_tile_i(d1, d23, B, n_out)
    num_tiles = d1 // tile_i
    # NOTE: for very large batches or very large d2*d3 an extra (parallel) batch
    # grid axis / a d23 grid axis would be the next step; not needed at these sizes.

    grid_spec = pltpu.PrefetchScalarGridSpec(
        num_scalar_prefetch=0,
        grid=(num_tiles,),
        in_specs=[
            pl.BlockSpec((B, tile_i, d23), lambda t: (0, t, 0)),      # x tile
            pl.BlockSpec((tile_i, r1), lambda t: (t, 0)),             # f1 rows for this tile
            pl.BlockSpec((n_out, r1, d23), lambda t: (0, 0, 0)),      # Q (resident)
        ],
        out_specs=(
            pl.BlockSpec((n_out, tile_i, d23), lambda t: (0, t, 0)),  # W^T tile (lane-dense)
            pl.BlockSpec((None, B, n_out), lambda t: (t, 0, 0)),      # per-tile partial y
        ),
    )

    w_t3, y_part = pl.pallas_call(
        _trl_kernel,
        out_shape=(
            jax.ShapeDtypeStruct((n_out, d1, d23), jnp.float32),
            jax.ShapeDtypeStruct((num_tiles, B, n_out), jnp.float32),
        ),
        grid_spec=grid_spec,
        compiler_params=pltpu.CompilerParams(
            # Every grid step writes disjoint W^T and y blocks -> truly parallel
            # (lets v7x shard the d1 stream across both TensorCores).
            dimension_semantics=("parallel",),
        ),
    )(x3, f1, q)

    # Tiny epilogue glue: reduce the per-tile partial y's and add the bias.
    y = jnp.sum(y_part, axis=0) + bias[0]

    if weight_layout == "transposed":
        # Lane-dense layout straight from the kernel; skips an extra HBM pass.
        regression_weights = w_t3.reshape(n_out, d1, d2, d3)
    else:
        # PyTorch module layout (d1, d2, d3, n_out); costs one XLA transpose.
        regression_weights = jnp.moveaxis(w_t3.reshape(n_out, d1, d2, d3), 0, -1)
    return regression_weights, y


def init_trl_params(key, input_size, ranks, output_size):
    """Deterministic parameter init mirroring the PyTorch __init__ (uniform(-0.1, 0.1))."""
    weight_size = list(input_size[1:]) + list(output_size[1:])
    assert len(weight_size) == len(ranks)
    keys = jax.random.split(key, 1 + len(weight_size))
    core = jax.random.uniform(keys[0], tuple(ranks), jnp.float32, -0.1, 0.1)
    factors = [
        jax.random.uniform(keys[1 + i], (in_size, rank), jnp.float32, -0.1, 0.1)
        for i, (in_size, rank) in enumerate(zip(weight_size, ranks))
    ]
    bias = jnp.zeros((1,), jnp.float32)  # tl.zeros(1) in the reference
    return core, factors, bias


if __name__ == "__main__":
    # Small shapes consistent with the module's 4-way Tucker regression:
    # x: (batch=2, channels=4, H=16, W=16), output: (batch, 10), ranks len 4.
    B, d1, d2, d3 = 2, 4, 16, 16
    n_out = 10
    input_size = (B, d1, d2, d3)
    output_size = (B, n_out)
    ranks = (3, 3, 3, 3)

    key = jax.random.PRNGKey(0)
    k_x, k_p = jax.random.split(key)
    x = jax.random.normal(k_x, input_size, jnp.float32)
    core, factors, bias = init_trl_params(k_p, input_size, ranks, output_size)

    W, y = jax.jit(trl_forward)(x, core, factors, bias)
    jax.block_until_ready((W, y))

    # Pure-JAX reference for correctness.
    f1, f2, f3, f4 = factors
    W_ref = jnp.einsum("abcd,ia,jb,kc,od->ijko", core, f1, f2, f3, f4)
    y_ref = jnp.einsum("bijk,ijko->bo", x, W_ref) + bias[0]

    assert W.shape == (d1, d2, d3, n_out) and y.shape == (B, n_out)
    np.testing.assert_allclose(np.asarray(W), np.asarray(W_ref), rtol=1e-5, atol=1e-5)
    np.testing.assert_allclose(np.asarray(y), np.asarray(y_ref), rtol=1e-4, atol=1e-4)

    print("KERNEL_OK")
</pallas_src>

<mosaic_0001>
module attributes {stable_mosaic.version = 11 : i64} {
  func.func @_trl_kernel(%arg0: i32, %arg1: memref<2x4x256xf32, #tpu.memory_space<vmem>>, %arg2: memref<4x3xf32, #tpu.memory_space<vmem>>, %arg3: memref<10x3x256xf32, #tpu.memory_space<vmem>>, %arg4: memref<10x4x256xf32, #tpu.memory_space<vmem>>, %arg5: memref<1x2x10xf32, #tpu.memory_space<vmem>>) attributes {dimension_semantics = [#tpu.dimension_semantics<parallel>], iteration_bounds = array<i64: 1>, scalar_prefetch = 0 : i64, scratch_operands = 0 : i64, tpu.core_type = #tpu.core_type<tc>, window_params = [{transform_indices = @transform_0, window_bounds = array<i64: 2, 4, 256>}, {transform_indices = @transform_1, window_bounds = array<i64: 4, 3>}, {pipeline_mode = #tpu.pipeline_mode<synchronous>, transform_indices = @transform_2, window_bounds = array<i64: 10, 3, 256>}, {transform_indices = @transform_3, window_bounds = array<i64: 10, 4, 256>}, {transform_indices = @transform_4, window_bounds = array<i64: 1, 2, 10>}]} {
    %c0 = arith.constant 0 : index
    %c0_0 = arith.constant 0 : index
    %c0_1 = arith.constant 0 : index
    %0 = vector.load %arg1[%c0, %c0_0, %c0_1] : memref<2x4x256xf32, #tpu.memory_space<vmem>>, vector<2x4x256xf32>
    %c0_2 = arith.constant 0 : index
    %c0_3 = arith.constant 0 : index
    %1 = vector.load %arg2[%c0_2, %c0_3] : memref<4x3xf32, #tpu.memory_space<vmem>>, vector<4x3xf32>
    %c0_4 = arith.constant 0 : index
    %c0_5 = arith.constant 0 : index
    %c0_6 = arith.constant 0 : index
    %2 = vector.load %arg3[%c0_4, %c0_5, %c0_6] : memref<10x3x256xf32, #tpu.memory_space<vmem>>, vector<10x3x256xf32>
    %cst = arith.constant 0.000000e+00 : f32
    %3 = vector.broadcast %cst : f32 to vector<10x4x256xf32>
    %cst_7 = arith.constant 0.000000e+00 : f32
    %4 = vector.broadcast %cst_7 : f32 to vector<2x10xf32>
    %5 = vector.extract_strided_slice %1 {offsets = [0, 0], sizes = [4, 1], strides = [1, 1]} : vector<4x3xf32> to vector<4x1xf32>
    %6 = vector.extract_strided_slice %2 {offsets = [0, 0, 0], sizes = [10, 1, 256], strides = [1, 1, 1]} : vector<10x3x256xf32> to vector<10x1x256xf32>
    %7 = vector.shape_cast %6 : vector<10x1x256xf32> to vector<10x256xf32>
    %8 = vector.shape_cast %5 : vector<4x1xf32> to vector<1x4x1xf32>
    %9 = vector.shape_cast %7 : vector<10x256xf32> to vector<10x1x256xf32>
    %10 = vector.broadcast %8 : vector<1x4x1xf32> to vector<10x4x256xf32>
    %11 = vector.broadcast %9 : vector<10x1x256xf32> to vector<10x4x256xf32>
    %12 = arith.mulf %10, %11 : vector<10x4x256xf32>
    %13 = arith.addf %3, %12 : vector<10x4x256xf32>
    %14 = vector.shape_cast %5 : vector<4x1xf32> to vector<1x4x1xf32>
    %15 = vector.broadcast %14 : vector<1x4x1xf32> to vector<2x4x256xf32>
    %16 = arith.mulf %0, %15 : vector<2x4x256xf32>
    %cst_8 = arith.constant dense<0.000000e+00> : vector<2x256xf32>
    %17 = vector.multi_reduction <add>, %16, %cst_8 [1] : vector<2x4x256xf32> to vector<2x256xf32>
    %cst_9 = arith.constant dense<0.000000e+00> : vector<2x10xf32>
    %18 = tpu.matmul %17, %7, %cst_9 {dimension_numbers = #tpu.dot_dimension_numbers<[1], [1], [0], [0], [0, 0, 1, 0], [], []>} : vector<2x256xf32>, vector<10x256xf32>, vector<2x10xf32> -> vector<2x10xf32>
    %19 = arith.addf %4, %18 : vector<2x10xf32>
    %20 = vector.extract_strided_slice %1 {offsets = [0, 1], sizes = [4, 1], strides = [1, 1]} : vector<4x3xf32> to vector<4x1xf32>
    %21 = vector.extract_strided_slice %2 {offsets = [0, 1, 0], sizes = [10, 1, 256], strides = [1, 1, 1]} : vector<10x3x256xf32> to vector<10x1x256xf32>
    %22 = vector.shape_cast %21 : vector<10x1x256xf32> to vector<10x256xf32>
    %23 = vector.shape_cast %20 : vector<4x1xf32> to vector<1x4x1xf32>
    %24 = vector.shape_cast %22 : vector<10x256xf32> to vector<10x1x256xf32>
    %25 = vector.broadcast %23 : vector<1x4x1xf32> to vector<10x4x256xf32>
    %26 = vector.broadcast %24 : vector<10x1x256xf32> to vector<10x4x256xf32>
    %27 = arith.mulf %25, %26 : vector<10x4x256xf32>
    %28 = arith.addf %13, %27 : vector<10x4x256xf32>
    %29 = vector.shape_cast %20 : vector<4x1xf32> to vector<1x4x1xf32>
    %30 = vector.broadcast %29 : vector<1x4x1xf32> to vector<2x4x256xf32>
    %31 = arith.mulf %0, %30 : vector<2x4x256xf32>
    %cst_10 = arith.constant dense<0.000000e+00> : vector<2x256xf32>
    %32 = vector.multi_reduction <add>, %31, %cst_10 [1] : vector<2x4x256xf32> to vector<2x256xf32>
    %cst_11 = arith.constant dense<0.000000e+00> : vector<2x10xf32>
    %33 = tpu.matmul %32, %22, %cst_11 {dimension_numbers = #tpu.dot_dimension_numbers<[1], [1], [0], [0], [0, 0, 1, 0], [], []>} : vector<2x256xf32>, vector<10x256xf32>, vector<2x10xf32> -> vector<2x10xf32>
    %34 = arith.addf %19, %33 : vector<2x10xf32>
    %35 = vector.extract_strided_slice %1 {offsets = [0, 2], sizes = [4, 1], strides = [1, 1]} : vector<4x3xf32> to vector<4x1xf32>
    %36 = vector.extract_strided_slice %2 {offsets = [0, 2, 0], sizes = [10, 1, 256], strides = [1, 1, 1]} : vector<10x3x256xf32> to vector<10x1x256xf32>
    %37 = vector.shape_cast %36 : vector<10x1x256xf32> to vector<10x256xf32>
    %38 = vector.shape_cast %35 : vector<4x1xf32> to vector<1x4x1xf32>
    %39 = vector.shape_cast %37 : vector<10x256xf32> to vector<10x1x256xf32>
    %40 = vector.broadcast %38 : vector<1x4x1xf32> to vector<10x4x256xf32>
    %41 = vector.broadcast %39 : vector<10x1x256xf32> to vector<10x4x256xf32>
    %42 = arith.mulf %40, %41 : vector<10x4x256xf32>
    %43 = arith.addf %28, %42 : vector<10x4x256xf32>
    %44 = vector.shape_cast %35 : vector<4x1xf32> to vector<1x4x1xf32>
    %45 = vector.broadcast %44 : vector<1x4x1xf32> to vector<2x4x256xf32>
    %46 = arith.mulf %0, %45 : vector<2x4x256xf32>
    %cst_12 = arith.constant dense<0.000000e+00> : vector<2x256xf32>
    %47 = vector.multi_reduction <add>, %46, %cst_12 [1] : vector<2x4x256xf32> to vector<2x256xf32>
    %cst_13 = arith.constant dense<0.000000e+00> : vector<2x10xf32>
    %48 = tpu.matmul %47, %37, %cst_13 {dimension_numbers = #tpu.dot_dimension_numbers<[1], [1], [0], [0], [0, 0, 1, 0], [], []>} : vector<2x256xf32>, vector<10x256xf32>, vector<2x10xf32> -> vector<2x10xf32>
    %49 = arith.addf %34, %48 : vector<2x10xf32>
    %c0_14 = arith.constant 0 : index
    %c0_15 = arith.constant 0 : index
    %c0_16 = arith.constant 0 : index
    %50 = vector.load %arg4[%c0_14, %c0_15, %c0_16] : memref<10x4x256xf32, #tpu.memory_space<vmem>>, vector<10x4x256xf32>
    tpu.vector_store %arg4[%c0_14, %c0_15, %c0_16], %43 {strides = array<i32>} : memref<10x4x256xf32, #tpu.memory_space<vmem>>, vector<10x4x256xf32>,
    %c0_17 = arith.constant 0 : index
    %c0_18 = arith.constant 0 : index
    %c0_19 = arith.constant 0 : index
    %51 = vector.load %arg5[%c0_17, %c0_18, %c0_19] : memref<1x2x10xf32, #tpu.memory_space<vmem>>, vector<1x2x10xf32>
    %52 = vector.shape_cast %51 : vector<1x2x10xf32> to vector<2x10xf32>
    %53 = vector.shape_cast %49 : vector<2x10xf32> to vector<1x2x10xf32>
    tpu.vector_store %arg5[%c0_17, %c0_18, %c0_19], %53 {strides = array<i32>} : memref<1x2x10xf32, #tpu.memory_space<vmem>>, vector<1x2x10xf32>,
    return
  }
  func.func @transform_0(%arg0: i32) -> (i32, i32, i32) {
    %c0_i32 = arith.constant 0 : i32
    %c0_i32_0 = arith.constant 0 : i32
    %c0_i32_1 = arith.constant 0 : i32
    return %c0_i32, %arg0, %c0_i32_0 : i32, i32, i32
  }
  func.func @transform_1(%arg0: i32) -> (i32, i32) {
    %c0_i32 = arith.constant 0 : i32
    %c0_i32_0 = arith.constant 0 : i32
    return %arg0, %c0_i32 : i32, i32
  }
  func.func @transform_2(%arg0: i32) -> (i32, i32, i32) {
    %c0_i32 = arith.constant 0 : i32
    %c0_i32_0 = arith.constant 0 : i32
    %c0_i32_1 = arith.constant 0 : i32
    %c0_i32_2 = arith.constant 0 : i32
    return %c0_i32, %c0_i32_0, %c0_i32_1 : i32, i32, i32
  }
  func.func @transform_3(%arg0: i32) -> (i32, i32, i32) {
    %c0_i32 = arith.constant 0 : i32
    %c0_i32_0 = arith.constant 0 : i32
    %c0_i32_1 = arith.constant 0 : i32
    return %c0_i32, %arg0, %c0_i32_0 : i32, i32, i32
  }
  func.func @transform_4(%arg0: i32) -> (i32, i32, i32) {
    %c0_i32 = arith.constant 0 : i32
    %c0_i32_0 = arith.constant 0 : i32
    %c0_i32_1 = arith.constant 0 : i32
    return %arg0, %c0_i32, %c0_i32_0 : i32, i32, i32
  }
}

</mosaic_0001>

<bundles_post_ra>
// kernel: trl_forward.1
= control target key start
LH: loop header
LB: loop body
LE: loop exit
PB: predicated region body
PF: predicated region fallthrough
CT: control target
= control target key end

     0   :  { %v44_v0 = vlaneseq  ;;  %v1230_v1 = vmov 0   ;;  %v1231_v3 = vmov 2   ;;  %v1232_v13 = vmov 1   ;;  %s2155_s1 = inlined_call_operand.vmem [shape: f32[4,3], index: 1, kind: input, shape index: {}]   ;;  %s2156_s2 = inlined_call_operand.vmem [shape: f32[10,3,256], index: 2, kind: input, shape index: {}]   ;;  %s2157_s0 = inlined_call_operand.vmem [shape: f32[2,4,256], index: 0, kind: input, shape index: {}]   ;;  %s2158_s3 = inlined_call_operand.vmem [shape: f32[10,4,256], index: 3, kind: output, shape index: {0}]   ;;  %s2159_s4 = inlined_call_operand.vmem [shape: f32[1,2,10], index: 4, kind: output, shape index: {1}]  }
   0x1   :  { %1226 = vset.pattern.permute.xlu0 %v1230_v1  ;;  %v18_v2 = vld [vmem:[%s2155_s1] sm:$0xf]  ;;  %1228 = vset.pattern.permute.xlu1 %v1231_v3  ;;  %v1270_v5 = vld [vmem:[%s2156_s2 + $0x8] sm:$0x77]  ;;  %v1275_v6 = vld [vmem:[%s2156_s2 + $0x10] sm:$0x77] }
   0x2   :  { %31 = vperm.xlu0 %1226, %v18_v2   ;;  %781 = vperm.xlu1 %1228, %v18_v2   ;;  %v1265_v4 = vld [vmem:[%s2156_s2] sm:$0x77]  ;;  %v1280_v7 = vld [vmem:[%s2156_s2 + $0x18] sm:$0x77]  ;;  %v1287_v9 = vshrl.u32 %v44_v0, 7  ;;  %vm581_vm0 = vcmask 1041409  }
   0x3   :  { %v1285_v8 = vld [vmem:[%s2156_s2 + $0x20] sm:$0x77]  ;;  %v1292_v10 = vld [vmem:[%s2156_s2 + $0x28] sm:$0x77]  ;;  %v1297_v11 = vld [vmem:[%s2156_s2 + $0x30] sm:$0x77] }
   0x4   :  { %v1302_v12 = vld [vmem:[%s2156_s2 + $0x38] sm:$0x77]  ;;  %v1307_v14 = vld [vmem:[%s2156_s2 + $0x40] sm:$0x77]  ;;  %v1310_v15 = vsub.s32 0, %v1287_v9  ;;  %v50_v16 = vsub.s32 4, %v1287_v9 }
   0x5   :  { %v1314_v17 = vsub.s32 1, %v1287_v9  ;;  %v1319_v18 = vld [vmem:[%s2156_s2 + $0x48] sm:$0x77]  ;;  %vm587_vm1 = vcmask 1042434   ;;  %vm589_vm2 = vcmask 1043459   ;;  %vm591_vm3 = vcmask 1044484  }
   0x6   :  { %1227 = vset.pattern.permute.xlu0 %v1232_v13  ;;  %vm593_vm4 = vcmask 1045509   ;;  %v1322_v19 = vrot.slane %v1265_v4, %v50_v16  ;;  %v1325_v20 = vrot.slane %v1270_v5, %v50_v16  ;;  %v1328_v21 = vrot.slane %v1275_v6, %v50_v16 }
   0x7   :  { %310 = vperm.xlu0 %1227, %v18_v2   ;;  %v1331_v22 = vrot.slane %v1280_v7, %v50_v16  ;;  %v1334_v23 = vrot.slane %v1285_v8, %v50_v16  ;;  %v1337_v24 = vrot.slane %v1292_v10, %v50_v16  ;;  %v1340_v25 = vrot.slane %v1297_v11, %v50_v16 }
   0x8   :  { %v1343_v26 = vrot.slane %v1302_v12, %v50_v16  ;;  %v1346_v27 = vrot.slane %v1307_v14, %v50_v16  ;;  %v1349_v28 = vrot.slane %v1319_v18, %v50_v16  ;;  %vm595_vm5 = vcmask 1046534  }
   0x9   :  { %vm597_vm6 = vcmask 1047559   ;;  %v697_v39 = vsel %vm581_vm0, %v1325_v20, %v1322_v19  ;;  %v1380_v42 = vsub.s32 2, %v1287_v9  ;;  %v1384_v43 = vrot.slane %v1265_v4, %v1310_v15 }
   0xa   :  { %v705_v40 = vsel %vm581_vm0, %v1349_v28, %v1346_v27  ;;  %v698_v41 = vsel %vm587_vm1, %v1328_v21, %v697_v39  ;;  %v1388_v44 = vrot.slane %v1270_v5, %v1310_v15  ;;  %v1394_v46 = vrot.slane %v1275_v6, %v1310_v15 }
   0xb   :  { %1229 = vset.pattern.permute.xlu0 %v1231_v3  ;;  %v699_v45 = vsel %vm589_vm2, %v1331_v22, %v698_v41  ;;  %v1398_v47 = vrot.slane %v1280_v7, %v1310_v15  ;;  %v1402_v48 = vrot.slane %v1285_v8, %v1310_v15  ;;  %v1408_v50 = vrot.slane %v1292_v10, %v1310_v15 }
   0xc   :  { %v700_v49 = vsel %vm591_vm3, %v1334_v23, %v699_v45  ;;  %v1412_v51 = vrot.slane %v1297_v11, %v1310_v15  ;;  %v1416_v52 = vrot.slane %v1302_v12, %v1310_v15  ;;  %v1422_v54 = vrot.slane %v1307_v14, %v1310_v15 }
   0xd   :  { %v701_v53 = vsel %vm593_vm4, %v1337_v24, %v700_v49  ;;  %v1426_v55 = vrot.slane %v1319_v18, %v1310_v15  ;;  %v690_v16 = vsel %vm581_vm0, %v1388_v44, %v1384_v43  ;;  %v319_v41 = vsub.s32 5, %v1287_v9 }
   0xe   :  { %v702_v57 = vsel %vm595_vm5, %v1340_v25, %v701_v53  ;;  %v691_v45 = vsel %vm587_vm1, %v1394_v46, %v690_v16  ;;  %v1467_v49 = vrot.slane %v1270_v5, %v1314_v17  ;;  %v1471_v53 = vrot.slane %v1275_v6, %v1314_v17 }
   0xf   :  { %v703_v61 = vsel %vm597_vm6, %v1343_v26, %v702_v57  ;;  %v704_v39 = vsel %vm581_vm0, %v1426_v55, %v1422_v54  ;;  %v1475_v57 = vrot.slane %v1280_v7, %v1314_v17  ;;  %v1483_v16 = vrot.slane %v1270_v5, %v319_v41 }
  0x10   :  { %v1211_v1 = vpack.c.bf16 %v705_v40, %v703_v61  ;;  %v1461_v40 = vrot.slane %v1265_v4, %v1314_v17  ;;  %2177 = vst [vmem:[#allocation2_spill] sm:$0xff] %v1471_v53  ;;  %v692_v61 = vsel %vm589_vm2, %v1398_v47, %v691_v45  ;;  %v1486_v13 = vrot.slane %v1275_v6, %v319_v41 }
  0x11   :  { %2178 = vst [vmem:[#allocation3_spill] sm:$0xff] %v1475_v57  ;;  %v693_v3 = vsel %vm591_vm3, %v1402_v48, %v692_v61  ;;  %v1491_v2 = vrot.slane %v1280_v7, %v319_v41  ;;  %v1494_v0 = vrot.slane %v1285_v8, %v319_v41  ;;  %v1497_v45 = vrot.slane %v1292_v10, %v319_v41 }
  0x12   :  { %1212 = vmatprep.subr.bf16.mxu0 %v1211_v1  ;;  %v1480_v1 = vrot.slane %v1265_v4, %v319_v41  ;;  %v694_v63 = vsel %vm593_vm4, %v1408_v50, %v693_v3  ;;  %v1502_v62 = vrot.slane %v1297_v11, %v319_v41  ;;  %v1505_v60 = vrot.slane %v1302_v12, %v319_v41 }
  0x13   :  { %v1508_v61 = vrot.slane %v1307_v14, %v319_v41  ;;  %v695_v59 = vsel %vm595_vm5, %v1412_v51, %v694_v63  ;;  %v1513_v58 = vrot.slane %v1319_v18, %v319_v41  ;;  %v1547_v3 = vrot.slane %v1285_v8, %v1314_v17 }
  0x14   :  { %v696_v38 = vsel %vm597_vm6, %v1416_v52, %v695_v59  ;;  %v599_v63 = vsel %vm581_vm0, %v1483_v16, %v1480_v1  ;;  %v1551_v59 = vrot.slane %v1292_v10, %v1314_v17  ;;  %v1555_v37 = vrot.slane %v1297_v11, %v1314_v17 }
  0x15   :  { %v1213_v41 = vpack.c.bf16 %v704_v39, %v696_v38  ;;  %v607_v38 = vsel %vm581_vm0, %v1513_v58, %v1508_v61  ;;  %v600_v39 = vsel %vm587_vm1, %v1486_v13, %v599_v63  ;;  %2179 = vst [vmem:[#allocation4_spill] sm:$0xff] %v1547_v3  ;;  %v1565_v63 = vrot.slane %v1307_v14, %v1314_v17 }
  0x16   :  { %2180 = vst [vmem:[#allocation5_spill] sm:$0xff] %v1551_v59  ;;  %2181 = vst [vmem:[#allocation6_spill] sm:$0xff] %v1555_v37  ;;  %v601_v56 = vsel %vm589_vm2, %v1491_v2, %v600_v39  ;;  %v1569_v35 = vrot.slane %v1319_v18, %v1314_v17  ;;  %v790_v29 = vsub.s32 6, %v1287_v9  ;;  %vm280_vm7 = vcmask 1043456  }
  0x17   :  { %1214 = vmatpush1.bf16.xpose.msra.mxu0 %v1213_v41  ;;  %v1561_v41 = vrot.slane %v1302_v12, %v1314_v17  ;;  %2183 = vst [vmem:[#allocation8_spill] sm:$0xff] %v1565_v63  ;;  %v602_v36 = vsel %vm591_vm3, %v1494_v0, %v601_v56  ;;  %v586_v56 = vsel %vm581_vm0, %v1467_v49, %v1461_v40  ;;  %vm1197_vm8 = vcmask 74752  }
  0x18   :  { %2184 = vst [vmem:[#allocation9_spill] sm:$0xff] %v1569_v35  ;;  %v603_v32 = vsel %vm593_vm4, %v1497_v45, %v602_v36  ;;  %v588_v39 = vsel %vm587_vm1, %v1471_v53, %v586_v56  ;;  %v1609_v36 = vrot.slane %v1265_v4, %v1380_v42  ;;  %v1626_v56 = vrot.slane %v1280_v7, %v1380_v42 }
  0x19   :  { %2182 = vst [vmem:[#allocation7_spill] sm:$0xff] %v1561_v41  ;;  %v604_v34 = vsel %vm595_vm5, %v1502_v62, %v603_v32  ;;  %v590_v33 = vsel %vm589_vm2, %v1475_v57, %v588_v39  ;;  %v1622_v39 = vrot.slane %v1275_v6, %v1380_v42  ;;  %v1645_v57 = vrot.slane %v1285_v8, %v790_v29 }
  0x1a   :  { %v605_v31 = vsel %vm597_vm6, %v1505_v60, %v604_v34  ;;  %v1613_v34 = vrot.slane %v1270_v5, %v1380_v42 }
  0x1b   :  { %v1207_v32 = vpack.c.bf16 %v607_v38, %v605_v31  ;;  %v592_v31 = vsel %vm591_vm3, %v1547_v3, %v590_v33  ;;  %v606_v38 = vsel %vm581_vm0, %v1569_v35, %v1565_v63  ;;  %v1634_v33 = vrot.slane %v1270_v5, %v790_v29 }
  0x1c   :  { %2185 = vst [vmem:[#allocation10_spill] sm:$0xff] %v1613_v34  ;;  %v594_v30 = vsel %vm593_vm4, %v1551_v59, %v592_v31  ;;  %v1637_v3 = vrot.slane %v1275_v6, %v790_v29  ;;  %v1642_v63 = vrot.slane %v1280_v7, %v790_v29  ;;  %v1653_v5 = vrot.slane %v1297_v11, %v790_v29 }
  0x1d   :  { %1208 = vmatprep.subr.bf16.mxu1 %v1207_v32  ;;  %v1631_v32 = vrot.slane %v1265_v4, %v790_v29  ;;  %v596_v35 = vsel %vm595_vm5, %v1555_v37, %v594_v30  ;;  %v1650_v4 = vrot.slane %v1292_v10, %v790_v29  ;;  %v1656_v6 = vrot.slane %v1302_v12, %v790_v29 }
  0x1e   :  { %v598_v31 = vsel %vm597_vm6, %v1561_v41, %v596_v35  ;;  %v1659_v30 = vrot.slane %v1307_v14, %v790_v29  ;;  %v1662_v7 = vrot.slane %v1319_v18, %v790_v29  ;;  %v1698_v35 = vrot.slane %v1292_v10, %v1380_v42 }
  0x1f   :  { %v1209_v59 = vpack.c.bf16 %v606_v38, %v598_v31  ;;  %v1063_v38 = vsel %vm581_vm0, %v1634_v33, %v1631_v32  ;;  %v1692_v31 = vrot.slane %v1285_v8, %v1380_v42  ;;  %v1702_v41 = vrot.slane %v1297_v11, %v1380_v42 }
  0x20   :  { %2186 = vst [vmem:[#allocation11_spill] sm:$0xff] %v1662_v7  ;;  %v1064_v37 = vsel %vm587_vm1, %v1637_v3, %v1063_v38  ;;  %2187 = vst [vmem:[#allocation12_spill] sm:$0xff] %v1698_v35  ;;  %v1706_v29 = vrot.slane %v1302_v12, %v1380_v42  ;;  %v1712_v8 = vrot.slane %v1307_v14, %v1380_v42 }
  0x21   :  { %1210 = vmatpush1.bf16.xpose.msra.mxu1 %v1209_v59  ;;  %v1071_v59 = vsel %vm581_vm0, %v1662_v7, %v1659_v30  ;;  %2188 = vst [vmem:[#allocation13_spill] sm:$0xff] %v1702_v41  ;;  %v1065_v53 = vsel %vm589_vm2, %v1642_v63, %v1064_v37  ;;  %v1716_v38 = vrot.slane %v1319_v18, %v1380_v42 }
  0x22   :  { %2189 = vst [vmem:[#allocation14_spill] sm:$0xff] %v1706_v29  ;;  %2190 = vst [vmem:[#allocation15_spill] sm:$0xff] %v1712_v8  ;;  %v1066_v11 = vsel %vm591_vm3, %v1645_v57, %v1065_v53  ;;  %v1056_v10 = vsel %vm581_vm0, %v1613_v34, %v1609_v36 }
  0x23   :  { %2191 = vst [vmem:[#allocation16_spill] sm:$0xff] %v1716_v38  ;;  %v1067_v7 = vsel %vm593_vm4, %v1650_v4, %v1066_v11  ;;  %v1057_v37 = vsel %vm587_vm1, %v1622_v39, %v1056_v10  ;;  %v1233_v10 = vmov 839922192  }
  0x24   :  { %v1068_v12 = vsel %vm595_vm5, %v1653_v5, %v1067_v7  ;;  %v1752_v7 = vsel %vm581_vm0, %v1716_v38, %v1712_v8  ;;  %v1058_v14 = vsel %vm589_vm2, %v1626_v56, %v1057_v37 }
  0x25   :  { %v1069_v18 = vsel %vm597_vm6, %v1656_v6, %v1068_v12  ;;  %2192 = vst [vmem:[#allocation17_spill] sm:$0xff] %v1752_v7  ;;  %v1059_v12 = vsel %vm591_vm3, %v1692_v31, %v1058_v14 }
  0x26   :  { %v1215_v53 = vpack.c.bf16 %v1071_v59, %v1069_v18  ;;  %v1060_v11 = vsel %vm593_vm4, %v1698_v35, %v1059_v12  ;;  %v265_v18 = vunpack.c.l.s4 %v1233_v10  ;;  %v2194_v12 = vrot.slane %v1322_v19, %v1310_v15 }
  0x27   :  { %v1061_v34 = vsel %vm595_vm5, %v1702_v41, %v1060_v11  ;;  %v2196_v10 = vrot.slane %v1328_v21, %v1310_v15  ;;  %v2198_v19 = vrot.slane %v1334_v23, %v1310_v15  ;;  %v2200_v21 = vrot.slane %v1340_v25, %v1310_v15 }
  0x28   :  { %1216 = vmatprep.subr.bf16.mxu0 %v1215_v53  ;;  %v1766_v38 = vsel %vm597_vm6, %v1706_v29, %v1061_v34  ;;  %v266_v37 = vunpack.c.0.s8 %v265_v18  ;;  %v2195_v34 = vrot.slane %v1325_v20, %v1310_v15  ;;  %v2199_v20 = vrot.slane %v1337_v24, %v1310_v15 }
  0x29   :  { %2193 = vst [vmem:[#allocation18_spill] sm:$0xff] %v1766_v38  ;;  %v2202_v23 = vrot.slane %v1346_v27, %v1310_v15  ;;  %v2203_v24 = vrot.slane %v1349_v28, %v1310_v15  ;;  %v2204_v25 = vrot.slane %v1384_v43, %v1310_v15  ;;  %v2206_v27 = vrot.slane %v1394_v46, %v1310_v15 }
  0x2a   :  { %v1773_v14 = vsub.s32 %v266_v37, %v1287_v9  ;;  %v2197_v9 = vrot.slane %v1331_v22, %v1310_v15  ;;  %v2201_v22 = vrot.slane %v1343_v26, %v1310_v15  ;;  %v2205_v26 = vrot.slane %v1388_v44, %v1310_v15 }
  0x2b   :  { %v2207_v28 = vrot.slane %v1398_v47, %v1310_v15  ;;  %v2208_v43 = vrot.slane %v1402_v48, %v1310_v15  ;;  %v2209_v44 = vrot.slane %v1408_v50, %v1310_v15  ;;  %v2210_v46 = vrot.slane %v1412_v51, %v1310_v15 }
  0x2c   :  { %v2211_v47 = vrot.slane %v1416_v52, %v1310_v15  ;;  %v2212_v48 = vrot.slane %v1422_v54, %v1310_v15  ;;  %v2213_v50 = vrot.slane %v1426_v55, %v1310_v15  ;;  %v2214_v51 = vrot.slane %v1480_v1, %v1314_v17 }
  0x2d   :  { %v2215_v52 = vrot.slane %v1483_v16, %v1314_v17  ;;  %v2216_v54 = vrot.slane %v1486_v13, %v1314_v17  ;;  %v2217_v15 = vrot.slane %v1491_v2, %v1314_v17  ;;  %v2218_v1 = vrot.slane %v1494_v0, %v1314_v17 }
  0x2e   :  { %v2219_v16 = vrot.slane %v1497_v45, %v1314_v17  ;;  %v2220_v13 = vrot.slane %v1502_v62, %v1314_v17  ;;  %v2221_v2 = vrot.slane %v1505_v60, %v1314_v17  ;;  %v2222_v0 = vrot.slane %v1508_v61, %v1314_v17 }
  0x2f   :  { %v2223_v45 = vrot.slane %v1513_v58, %v1314_v17  ;;  %v2224_v61 = vrot.slane %v1461_v40, %v1314_v17  ;;  %v2225_v58 = vrot.slane %v1467_v49, %v1314_v17 }
  0x81   :  { %v1770_v53 = vpop.permute.xlu0 %31 }
  0x82   :  { %v225_v11 = vmul.f32 %v2194_v12, %v1770_v53  ;;  %v227_v8 = vmul.f32 %v2195_v34, %v1770_v53  ;;  %v229_v18 = vmul.f32 %v2196_v10, %v1770_v53  ;;  %v231_v37 = vmul.f32 %v2197_v9, %v1770_v53 }
  0x83   :  { %v233_v12 = vmul.f32 %v2198_v19, %v1770_v53  ;;  %v235_v34 = vmul.f32 %v2199_v20, %v1770_v53  ;;  %v237_v10 = vmul.f32 %v2200_v21, %v1770_v53  ;;  %v239_v9 = vmul.f32 %v2201_v22, %v1770_v53 }
  0x84   :  { %v241_v19 = vmul.f32 %v2202_v23, %v1770_v53  ;;  %v243_v20 = vmul.f32 %v2203_v24, %v1770_v53  ;;  %v224_v21 = vmul.f32 %v2204_v25, %v1770_v53  ;;  %v226_v22 = vmul.f32 %v2205_v26, %v1770_v53 }
  0x85   :  { %v228_v23 = vmul.f32 %v2206_v27, %v1770_v53  ;;  %v230_v24 = vmul.f32 %v2207_v28, %v1770_v53  ;;  %v232_v25 = vmul.f32 %v2208_v43, %v1770_v53  ;;  %v234_v26 = vmul.f32 %v2209_v44, %v1770_v53 }
  0x86   :  { %v1839_v59 = vpop.permute.xlu0 %310  ;;  %v236_v27 = vmul.f32 %v2210_v46, %v1770_v53  ;;  %v238_v28 = vmul.f32 %v2211_v47, %v1770_v53  ;;  %v240_v43 = vmul.f32 %v2212_v48, %v1770_v53  ;;  %v242_v44 = vmul.f32 %v2213_v50, %v1770_v53 }
  0x87   :  { %v494_v46 = vmul.f32 %v2214_v51, %v1839_v59  ;;  %v496_v47 = vmul.f32 %v2215_v52, %v1839_v59  ;;  %v498_v48 = vmul.f32 %v2216_v54, %v1839_v59  ;;  %v500_v55 = vmul.f32 %v2217_v15, %v1839_v59 }
  0x88   :  { %v502_v50 = vmul.f32 %v2218_v1, %v1839_v59  ;;  %v504_v51 = vmul.f32 %v2219_v16, %v1839_v59  ;;  %v506_v52 = vmul.f32 %v2220_v13, %v1839_v59  ;;  %v508_v54 = vmul.f32 %v2221_v2, %v1839_v59 }
  0x89   :  { %v510_v15 = vmul.f32 %v2222_v0, %v1839_v59  ;;  %v512_v1 = vmul.f32 %v2223_v45, %v1839_v59  ;;  %v514_v16 = vadd.f32 %v494_v46, %v225_v11  ;;  %v516_v38 = vadd.f32 %v496_v47, %v227_v8  ;;  %v2226_v8 = vld [vmem:[#allocation2_spill] sm:$0xff] }
  0x8a   :  { %v518_v7 = vadd.f32 %v498_v48, %v229_v18  ;;  %v520_v62 = vadd.f32 %v500_v55, %v231_v37  ;;  %v522_v13 = vadd.f32 %v502_v50, %v233_v12  ;;  %v524_v29 = vadd.f32 %v504_v51, %v235_v34  ;;  %v2228_v37 = vld [vmem:[#allocation3_spill] sm:$0xff]  ;;  %v2234_v46 = vld [vmem:[#allocation6_spill] sm:$0xff] }
  0x8b   :  { %v526_v41 = vadd.f32 %v506_v52, %v237_v10  ;;  %v528_v35 = vadd.f32 %v508_v54, %v239_v9  ;;  %v530_v60 = vadd.f32 %v510_v15, %v241_v19  ;;  %v532_v2 = vadd.f32 %v512_v1, %v243_v20  ;;  %v2230_v10 = vld [vmem:[#allocation4_spill] sm:$0xff]  ;;  %v2232_v19 = vld [vmem:[#allocation5_spill] sm:$0xff]  ;;  %v2236_v55 = vld [vmem:[#allocation7_spill] sm:$0xff] }
  0x8c   :  { %v493_v0 = vmul.f32 %v2224_v61, %v1839_v59  ;;  %v495_v45 = vmul.f32 %v2225_v58, %v1839_v59  ;;  %v2227_v11 = vrot.slane %v2226_v8, %v1314_v17  ;;  %v2229_v12 = vrot.slane %v2228_v37, %v1314_v17  ;;  %v2238_v52 = vld [vmem:[#allocation8_spill] sm:$0xff]  ;;  %v2240_v1 = vld [vmem:[#allocation9_spill] sm:$0xff] }
  0x8d   :  { %v2231_v40 = vrot.slane %v2230_v10, %v1314_v17  ;;  %v2233_v49 = vrot.slane %v2232_v19, %v1314_v17  ;;  %v2235_v47 = vrot.slane %v2234_v46, %v1314_v17  ;;  %v2237_v50 = vrot.slane %v2236_v55, %v1314_v17  ;;  %v1949_v19 = vpop.permute.xlu1 %781 }
  0x8e   :  { %v497_v18 = vmul.f32 %v2227_v11, %v1839_v59  ;;  %v499_v34 = vmul.f32 %v2229_v12, %v1839_v59  ;;  %v2239_v54 = vrot.slane %v2238_v52, %v1314_v17  ;;  %v2241_v61 = vrot.slane %v2240_v1, %v1314_v17 }
  0x8f   :  { %v501_v9 = vmul.f32 %v2231_v40, %v1839_v59  ;;  %v503_v20 = vmul.f32 %v2233_v49, %v1839_v59  ;;  %v505_v48 = vmul.f32 %v2235_v47, %v1839_v59  ;;  %v507_v51 = vmul.f32 %v2237_v50, %v1839_v59 }
  0x90   :  { %v509_v15 = vmul.f32 %v2239_v54, %v1839_v59  ;;  %v511_v58 = vmul.f32 %v2241_v61, %v1839_v59  ;;  %v1937_v8 = vadd.f32 %v493_v0, %v224_v21  ;;  %v1939_v11 = vadd.f32 %v495_v45, %v226_v22  ;;  %v1962_v22 = vld [vmem:[%s2157_s0] sm:$0xff] }
  0x91   :  { %v1941_v37 = vadd.f32 %v497_v18, %v228_v23  ;;  %v1943_v12 = vadd.f32 %v499_v34, %v230_v24  ;;  %v1945_v10 = vadd.f32 %v501_v9, %v232_v25  ;;  %v1947_v40 = vadd.f32 %v503_v20, %v234_v26  ;;  %v1967_v23 = vld [vmem:[%s2157_s0 + $0x8] sm:$0xff] }
  0x92   :  { %v1951_v49 = vadd.f32 %v505_v48, %v236_v27  ;;  %v1953_v46 = vadd.f32 %v507_v51, %v238_v28  ;;  %v1955_v17 = vadd.f32 %v509_v15, %v240_v43  ;;  %v1957_v21 = vadd.f32 %v511_v58, %v242_v44  ;;  %v2251_v48 = vld [vmem:[#allocation11_spill] sm:$0xff] }
  0x93   :  { %v270_v24 = vrot.slane %v1770_v53, %v1773_v14  ;;  %v2242_v25 = vrot.slane %v1631_v32, %v1380_v42  ;;  %v2243_v27 = vrot.slane %v1634_v33, %v1380_v42  ;;  %v2244_v43 = vrot.slane %v1637_v3, %v1380_v42 }
  0x94   :  { %v2245_v0 = vrot.slane %v1642_v63, %v1380_v42  ;;  %v2246_v32 = vrot.slane %v1645_v57, %v1380_v42  ;;  %v2247_v33 = vrot.slane %v1650_v4, %v1380_v42  ;;  %v2248_v3 = vrot.slane %v1653_v5, %v1380_v42 }
  0x95   :  { %v965_v26 = vmul.f32 %v2242_v25, %v1949_v19  ;;  %v967_v28 = vmul.f32 %v2243_v27, %v1949_v19  ;;  %v969_v44 = vmul.f32 %v2244_v43, %v1949_v19  ;;  %v272_v9 = vmul.f32 %v270_v24, %v1962_v22 }
  0x96   :  { %v971_v53 = vmul.f32 %v2245_v0, %v1949_v19  ;;  %v973_v45 = vmul.f32 %v2246_v32, %v1949_v19  ;;  %v975_v18 = vmul.f32 %v2247_v33, %v1949_v19  ;;  %v977_v34 = vmul.f32 %v2248_v3, %v1949_v19 }
  0x97   :  { %v273_v63 = vmul.f32 %v270_v24, %v1967_v23  ;;  %v2249_v20 = vrot.slane %v1656_v6, %v1380_v42  ;;  %v2250_v47 = vrot.slane %v1659_v30, %v1380_v42  ;;  %v2252_v55 = vrot.slane %v2251_v48, %v1380_v42  ;;  %v2263_v48 = vld [vmem:[#allocation14_spill] sm:$0xff] }
  0x98   :  { %v2013_v50 = vadd.f32 %v965_v26, %v514_v16  ;;  %v2015_v51 = vadd.f32 %v967_v28, %v516_v38  ;;  %v2017_v52 = vadd.f32 %v969_v44, %v518_v7  ;;  %v276_v54 = vcombine.high %v272_v9, %v272_v9 }
  0x99   :  { %v979_v57 = vmul.f32 %v2249_v20, %v1949_v19  ;;  %v981_v4 = vmul.f32 %v2250_v47, %v1949_v19  ;;  %v983_v5 = vmul.f32 %v2252_v55, %v1949_v19  ;;  %v277_v15 = vcombine.high %v273_v63, %v273_v63 }
  0x9a   :  { %v2019_v6 = vadd.f32 %v971_v53, %v520_v62  ;;  %v2021_v1 = vadd.f32 %v973_v45, %v522_v13  ;;  %v2023_v61 = vadd.f32 %v975_v18, %v524_v29  ;;  %v2025_v30 = vadd.f32 %v977_v34, %v526_v41  ;;  %v2259_v34 = vld [vmem:[#allocation12_spill] sm:$0xff] }
  0x9b   :  { %v2027_v58 = vadd.f32 %v979_v57, %v528_v35  ;;  %v2029_v24 = vadd.f32 %v981_v4, %v530_v60  ;;  %v288_v16 = vsel %vm280_vm7, %v276_v54, 0.0  ;;  %v302_v38 = vsel %vm280_vm7, %v277_v15, 0.0  ;;  %v2254_v60 = vld [vmem:[#allocation10_spill] sm:$0xff]  ;;  %v2265_v54 = vld [vmem:[#allocation15_spill] sm:$0xff] }
  0x9c   :  { %v2033_v7 = vadd.f32 %v983_v5, %v532_v2  ;;  %v281_v25 = vsel %vm280_vm7, %v272_v9, 0.0  ;;  %v289_v62 = vrot.slane %v288_v16, 4  ;;  %v303_v26 = vrot.slane %v302_v38, 4 }
  0x9d   :  { %v282_v13 = vrot.slane %v281_v25, 4  ;;  %v295_v29 = vsel %vm280_vm7, %v273_v63, 0.0  ;;  %v2253_v41 = vrot.slane %v1609_v36, %v1380_v42  ;;  %v2255_v28 = vrot.slane %v2254_v60, %v1380_v42  ;;  %v2261_v63 = vld [vmem:[#allocation13_spill] sm:$0xff] }
  0x9e   :  { %v296_v27 = vrot.slane %v295_v29, 4  ;;  %v2256_v2 = vrot.slane %v1622_v39, %v1380_v42  ;;  %v290_v0 = vadd.f32 %v289_v62, %v288_v16  ;;  %v304_v53 = vadd.f32 %v303_v26, %v302_v38  ;;  %v2267_v38 = vld [vmem:[#allocation16_spill] sm:$0xff] }
  0x9f   :  { %v964_v35 = vmul.f32 %v2253_v41, %v1949_v19  ;;  %v966_v43 = vmul.f32 %v2255_v28, %v1949_v19  ;;  %v283_v32 = vadd.f32 %v282_v13, %v281_v25  ;;  %v2257_v45 = vrot.slane %v1626_v56, %v1380_v42 }
  0xa0   :  { %v968_v44 = vmul.f32 %v2256_v2, %v1949_v19  ;;  %v297_v36 = vadd.f32 %v296_v27, %v295_v29  ;;  %v2258_v18 = vrot.slane %v1692_v31, %v1380_v42  ;;  %v2260_v9 = vrot.slane %v2259_v34, %v1380_v42 }
  0xa1   :  { %v970_v33 = vmul.f32 %v2257_v45, %v1949_v19  ;;  %v2262_v20 = vrot.slane %v2261_v63, %v1380_v42  ;;  %v291_v47 = vrot.slane %v290_v0, 2  ;;  %v305_v4 = vrot.slane %v304_v53, 2 }
  0xa2   :  { %v972_v3 = vmul.f32 %v2258_v18, %v1949_v19  ;;  %v974_v39 = vmul.f32 %v2260_v9, %v1949_v19  ;;  %v284_v56 = vrot.slane %v283_v32, 2  ;;  %v2264_v55 = vrot.slane %v2263_v48, %v1380_v42 }
  0xa3   :  { %v976_v57 = vmul.f32 %v2262_v20, %v1949_v19  ;;  %v298_v31 = vrot.slane %v297_v36, 2  ;;  %v2266_v15 = vrot.slane %v2265_v54, %v1380_v42  ;;  %v2268_v25 = vrot.slane %v2267_v38, %v1380_v42 }
  0xa4   :  { %v978_v5 = vmul.f32 %v2264_v55, %v1949_v19  ;;  %v984_v26 = vadd.f32 %v964_v35, %v1937_v8  ;;  %v292_v13 = vadd.f32 %v291_v47, %v290_v0  ;;  %v306_v29 = vadd.f32 %v305_v4, %v304_v53 }
  0xa5   :  { %v980_v16 = vmul.f32 %v2266_v15, %v1949_v19  ;;  %v982_v62 = vmul.f32 %v2268_v25, %v1949_v19  ;;  %v285_v27 = vadd.f32 %v284_v56, %v283_v32  ;;  %v986_v41 = vadd.f32 %v966_v43, %v1939_v11 }
  0xa6   :  { %v299_v60 = vadd.f32 %v298_v31, %v297_v36  ;;  %v988_v28 = vadd.f32 %v968_v44, %v1941_v37  ;;  %v990_v2 = vadd.f32 %v970_v33, %v1943_v12  ;;  %v992_v45 = vadd.f32 %v972_v3, %v1945_v10 }
  0xa7   :  { %v293_v18 = vrot.slane %v292_v13, 1  ;;  %v307_v34 = vrot.slane %v306_v29, 1  ;;  %v286_v9 = vrot.slane %v285_v27, 1  ;;  %v994_v42 = vadd.f32 %v974_v39, %v1947_v40 }
  0xa8   :  { %v300_v63 = vrot.slane %v299_v60, 1  ;;  %v996_v8 = vadd.f32 %v976_v57, %v1951_v49  ;;  %v998_v35 = vadd.f32 %v978_v5, %v1953_v46  ;;  %v1000_v0 = vadd.f32 %v980_v16, %v1955_v17 }
  0xa9   :  { %v294_v11 = vadd.f32 %v293_v18, %v292_v13  ;;  %v308_v43 = vadd.f32 %v307_v34, %v306_v29  ;;  %v287_v53 = vadd.f32 %v286_v9, %v285_v27  ;;  %v1002_v37 = vadd.f32 %v982_v62, %v1957_v21 }
  0xaa   :  { %v301_v12 = vadd.f32 %v300_v63, %v299_v60  ;;  %v1167_v10 = vcombine.low %v984_v26, %v2013_v50  ;;  %v1168_v44 = vcombine.low %v986_v41, %v2015_v51  ;;  %v1169_v32 = vcombine.low %v988_v28, %v2017_v52 }
  0xab   :  { %v687_v40 = vsel %vm581_vm0, %v308_v43, %v294_v11  ;;  %v1170_v49 = vcombine.low %v990_v2, %v2019_v6  ;;  %v1171_v46 = vcombine.low %v992_v45, %v2021_v1  ;;  %v1172_v17 = vcombine.low %v994_v42, %v2023_v61  ;;  %v2269_v1 = vld [vmem:[#allocation17_spill] sm:$0xff]  ;;  %v2270_v61 = vld [vmem:[#allocation18_spill] sm:$0xff] }
  0xac   :  { %774 = vmatprep.mubr.f32.mxu0 %v687_v40  ;;  %v686_v33 = vsel %vm581_vm0, %v301_v12, %v287_v53  ;;  %v1173_v21 = vcombine.low %v996_v8, %v2025_v30  ;;  %v1174_v36 = vcombine.low %v998_v35, %v2027_v58  ;;  %v1175_v50 = vcombine.low %v1000_v0, %v2029_v24 }
  0xad   :  { %1187 = vst [vmem:[%s2158_s3] sm:$0xff] %v1167_v10  ;;  %1188 = vst [vmem:[%s2158_s3 + $0x8] sm:$0xff] %v1168_v44  ;;  %775 = vmatmul.mubr.f32.vlgmr.msra.gmra.mrb[0].mxu0 %v686_v33  ;;  %v1176_v51 = vcombine.low %v1002_v37, %v2033_v7  ;;  %v1010_v52 = vrot.slane %v1949_v19, %v1773_v14  ;;  %v539_v6 = vrot.slane %v1839_v59, %v1773_v14 }
  0xae   :  { %1189 = vst [vmem:[%s2158_s3 + $0x10] sm:$0xff] %v1169_v32  ;;  %1190 = vst [vmem:[%s2158_s3 + $0x18] sm:$0xff] %v1170_v49  ;;  %v2271_v30 = vpack.c.bf16 %v2269_v1, %v2270_v61 }
  0xaf   :  { %1191 = vst [vmem:[%s2158_s3 + $0x20] sm:$0xff] %v1171_v46  ;;  %1192 = vst [vmem:[%s2158_s3 + $0x28] sm:$0xff] %v1172_v17  ;;  %v1012_v59 = vmul.f32 %v1010_v52, %v1962_v22  ;;  %v1013_v14 = vmul.f32 %v1010_v52, %v1967_v23  ;;  %v541_v19 = vmul.f32 %v539_v6, %v1962_v22 }
  0xb0   :  { %1218 = vmatpush1.bf16.xpose.msra.mxu0 %v2271_v30  ;;  %1193 = vst [vmem:[%s2158_s3 + $0x30] sm:$0xff] %v1173_v21  ;;  %1194 = vst [vmem:[%s2158_s3 + $0x38] sm:$0xff] %v1174_v36  ;;  %v542_v58 = vmul.f32 %v539_v6, %v1967_v23 }
  0xb1   :  { %1195 = vst [vmem:[%s2158_s3 + $0x40] sm:$0xff] %v1175_v50  ;;  %1196 = vst [vmem:[%s2158_s3 + $0x48] sm:$0xff] %v1176_v51  ;;  %v1016_v24 = vcombine.high %v1012_v59, %v1012_v59  ;;  %v1017_v7 = vcombine.high %v1013_v14, %v1013_v14  ;;  %v545_v3 = vcombine.high %v541_v19, %v541_v19  ;;  %v549_v20 = vsel %vm280_vm7, %v541_v19, 0.0 }
  0xb2   :  { %v546_v39 = vcombine.high %v542_v58, %v542_v58  ;;  %v563_v57 = vsel %vm280_vm7, %v542_v58, 0.0  ;;  %v1020_v47 = vsel %vm280_vm7, %v1012_v59, 0.0  ;;  %v1034_v4 = vsel %vm280_vm7, %v1013_v14, 0.0 }
  0xb3   :  { %v1027_v56 = vsel %vm280_vm7, %v1016_v24, 0.0  ;;  %v1041_v48 = vsel %vm280_vm7, %v1017_v7, 0.0  ;;  %v556_v22 = vsel %vm280_vm7, %v545_v3, 0.0  ;;  %v550_v15 = vrot.slane %v549_v20, 4 }
  0xb4   :  { %v570_v23 = vsel %vm280_vm7, %v546_v39, 0.0  ;;  %v1028_v55 = vrot.slane %v1027_v56, 4  ;;  %v1042_v5 = vrot.slane %v1041_v48, 4  ;;  %v557_v31 = vrot.slane %v556_v22, 4 }
  0xb5   :  { %v571_v54 = vrot.slane %v570_v23, 4  ;;  %v564_v16 = vrot.slane %v563_v57, 4  ;;  %v1021_v38 = vrot.slane %v1020_v47, 4  ;;  %v1035_v25 = vrot.slane %v1034_v4, 4 }
  0xb6   :  { %v1029_v62 = vadd.f32 %v1028_v55, %v1027_v56  ;;  %v1043_v26 = vadd.f32 %v1042_v5, %v1041_v48  ;;  %v558_v13 = vadd.f32 %v557_v31, %v556_v22  ;;  %v551_v27 = vadd.f32 %v550_v15, %v549_v20 }
  0xb7   :  { %v572_v29 = vadd.f32 %v571_v54, %v570_v23  ;;  %v565_v41 = vadd.f32 %v564_v16, %v563_v57  ;;  %v1022_v60 = vadd.f32 %v1021_v38, %v1020_v47  ;;  %v1036_v28 = vadd.f32 %v1035_v25, %v1034_v4 }
  0xb8   :  { %v1030_v2 = vrot.slane %v1029_v62, 2  ;;  %v1044_v45 = vrot.slane %v1043_v26, 2  ;;  %v559_v18 = vrot.slane %v558_v13, 2  ;;  %v552_v9 = vrot.slane %v551_v27, 2 }
  0xb9   :  { %v573_v34 = vrot.slane %v572_v29, 2  ;;  %v566_v42 = vrot.slane %v565_v41, 2  ;;  %v1023_v63 = vrot.slane %v1022_v60, 2  ;;  %v1037_v8 = vrot.slane %v1036_v28, 2 }
  0xba   :  { %v1031_v35 = vadd.f32 %v1030_v2, %v1029_v62  ;;  %v1045_v0 = vadd.f32 %v1044_v45, %v1043_v26  ;;  %v560_v11 = vadd.f32 %v559_v18, %v558_v13  ;;  %v553_v53 = vadd.f32 %v552_v9, %v551_v27 }
  0xbb   :  { %v574_v43 = vadd.f32 %v573_v34, %v572_v29  ;;  %v567_v37 = vadd.f32 %v566_v42, %v565_v41  ;;  %v1024_v12 = vadd.f32 %v1023_v63, %v1022_v60  ;;  %v1038_v10 = vadd.f32 %v1037_v8, %v1036_v28 }
  0xbc   :  { %v1032_v44 = vrot.slane %v1031_v35, 1  ;;  %v1046_v32 = vrot.slane %v1045_v0, 1  ;;  %v561_v40 = vrot.slane %v560_v11, 1  ;;  %v554_v46 = vrot.slane %v553_v53, 1 }
  0xbd   :  { %v575_v49 = vrot.slane %v574_v43, 1  ;;  %v568_v17 = vrot.slane %v567_v37, 1  ;;  %v1025_v33 = vrot.slane %v1024_v12, 1  ;;  %v1039_v21 = vrot.slane %v1038_v10, 1 }
  0xbe   :  { %v1033_v36 = vadd.f32 %v1032_v44, %v1031_v35  ;;  %v1047_v50 = vadd.f32 %v1046_v32, %v1045_v0  ;;  %v562_v51 = vadd.f32 %v561_v40, %v560_v11  ;;  %v555_v6 = vadd.f32 %v554_v46, %v553_v53 }
  0xbf   :  { %v576_v52 = vadd.f32 %v575_v49, %v574_v43  ;;  %v569_v1 = vadd.f32 %v568_v17, %v567_v37  ;;  %v1026_v61 = vadd.f32 %v1025_v33, %v1024_v12  ;;  %v1040_v30 = vadd.f32 %v1039_v21, %v1038_v10 }
  0xc0   :  { %v1053_v59 = vsel %vm581_vm0, %v1047_v50, %v1033_v36 }
  0xc1   :  { %v583_v14 = vsel %vm581_vm0, %v576_v52, %v562_v51  ;;  %1140 = vmatprep.mubr.f32.mxu0 %v1053_v59  ;;  %v582_v19 = vsel %vm581_vm0, %v569_v1, %v555_v6  ;;  %v1052_v58 = vsel %vm581_vm0, %v1040_v30, %v1026_v61 }
  0xc2   :  { %676 = vmatprep.mubr.f32.mxu1 %v583_v14  ;;  %1141 = vmatmul.mubr.f32.vlgmr.msra.gmra.mrb[0].mxu0 %v1052_v58 }
  0xc3   :  { %677 = vmatmul.mubr.f32.vlgmr.msra.gmra.mrb[0].mxu1 %v582_v19 }
 0x195   :  { %v1142_v7 = vpop.f32.mrb[0].mxu0 }
 0x196   :  { %v678_v24 = vpop.f32.mrb[0].mxu1  ;;  %v1144_v20 = vpop.f32.mrb[1].mxu0 }
 0x197   :  { %v680_v3 = vpop.f32.mrb[1].mxu1  ;;  %v1219_v39 = vadd.f32 %v1142_v7, %v678_v24 }
 0x199   :  { %1198 = vst.msk [vmem:[%s2159_s4] sm:$0x3] %vm1197_vm8, %v1219_v39 }

</bundles_post_ra>
